<compile_context>
chip_gen: v6e
topology: v6e:2x2x1
jax: 0.10.0
libtpu: 0.0.40
codegen_flags: <defaults>
</compile_context>

<pallas_src>
import functools

import jax
import jax.numpy as jnp
from jax.experimental import pallas as pl
from jax.experimental.pallas import tpu as pltpu


def _round_up(x, m):
    return (x + m - 1) // m * m


# ----------------------------- Pallas kernel -------------------------------

def _hotelling_kernel(scale_ref, x_ref, tT_ref, t2_ref, gram_ref, colsum_ref,
                      *, n_valid, tile_rows, mxu_dtype):
    """Grid = (row-tile i,).  Resident accumulators over the row axis.

    scale_ref  : SMEM (1,1) f32     1 / (2 * lengthscale^2)
    x_ref      : VMEM (tm, D)  f32  row tile of the dataset
    tT_ref     : VMEM (D, Jp)       (2*scale) * T^T  (pre-folded, mxu_dtype)
    t2_ref     : VMEM (1, Jp)  f32  -scale * sum(T*T, -1)
    gram_ref   : VMEM (Jp, Jp) f32  resident accumulator  K^T K (un-centered)
    colsum_ref : VMEM (1, Jp)  f32  resident accumulator  column sums of K
    """
    i = pl.program_id(0)

    @pl.when(i == 0)
    def _init():
        gram_ref[...] = jnp.zeros_like(gram_ref)
        colsum_ref[...] = jnp.zeros_like(colsum_ref)

    x = x_ref[...]                                               # (tm, D) f32

    # Distance matmul on the MXU; scale is pre-folded into tT / t2 so the
    # exp argument is  2*scale*x@T^T - scale*||T||^2 - scale*||x||^2.
    xt = jnp.dot(x.astype(mxu_dtype), tT_ref[...],
                 preferred_element_type=jnp.float32)             # (tm, Jp)
    x2 = jnp.sum(x * x, axis=1, keepdims=True)                   # (tm, 1)
    # gpytorch clamps sq >= 0  =>  clamp the (negated, scaled) argument at 0.
    neg_arg = jnp.minimum(xt + t2_ref[...] - x2 * scale_ref[0, 0], 0.0)
    k = jnp.exp(neg_arg)                                         # (tm, Jp) f32

    if n_valid % tile_rows != 0:
        # Only emitted when a ragged last tile exists (trace-time guard):
        # zero out rows past the valid count so they contribute nothing.
        row_ids = i * tile_rows + jax.lax.broadcasted_iota(
            jnp.int32, (tile_rows, 1), 0)
        k = jnp.where(row_ids < n_valid, k, 0.0)

    km = k.astype(mxu_dtype)
    # Gram: contract over the row axis directly (no in-kernel transpose).
    gram_ref[...] += jax.lax.dot_general(
        km, km, (((0,), (0,)), ((), ())), preferred_element_type=jnp.float32)
    # Column sum rides the MXU (ones-row matmul) instead of an XLU reduce.
    colsum_ref[...] += jnp.dot(jnp.ones((1, tile_rows), mxu_dtype), km,
                               preferred_element_type=jnp.float32)


def _hotelling_moments_one(Xd, tT_scaled, t2_scaled, scale, *,
                           tile_rows_cap=1024,
                           vmem_budget_bytes=24 * 1024 * 1024,
                           mxu_dtype=jnp.float32):
    """One dataset: returns (un-centered K^T K, column sums of K), padded to Jp."""
    n, d = Xd.shape
    Jp = tT_scaled.shape[1]

    # Row tile: as large as possible under the VMEM working-set budget.
    tm = min(_round_up(n, 8), _round_up(tile_rows_cap, 8))
    fixed = (2 * d * Jp * 4        # tT (pipeline buffers)
             + 2 * Jp * 4          # t2
             + 2 * Jp * Jp * 4     # resident gram accumulator
             + 2 * Jp * 4)         # resident colsum
    while tm > 8 and fixed + 2 * tm * d * 4 > vmem_budget_bytes:
        tm = max(8, _round_up(tm // 2, 8))

    grid = (pl.cdiv(n, tm),)
    scale_arr = jnp.asarray(scale, jnp.float32).reshape(1, 1)

    kernel = functools.partial(_hotelling_kernel, n_valid=n, tile_rows=tm,
                               mxu_dtype=mxu_dtype)

    flops = 2 * n * Jp * (d + Jp + 1)
    bytes_accessed = 4 * (n * d + d * Jp + Jp + Jp * Jp + Jp)

    gram, colsum = pl.pallas_call(
        kernel,
        out_shape=(jax.ShapeDtypeStruct((Jp, Jp), jnp.float32),
                   jax.ShapeDtypeStruct((1, Jp), jnp.float32)),
        grid=grid,
        in_specs=[
            pl.BlockSpec(memory_space=pltpu.MemorySpace.SMEM),   # scale
            pl.BlockSpec((tm, d), lambda i: (i, 0)),             # dataset rows
            pl.BlockSpec((d, Jp), lambda i: (0, 0)),             # (2*scale)*T^T
            pl.BlockSpec((1, Jp), lambda i: (0, 0)),             # -scale*||T||^2
        ],
        out_specs=(
            pl.BlockSpec((Jp, Jp), lambda i: (0, 0)),            # resident acc
            pl.BlockSpec((1, Jp), lambda i: (0, 0)),             # resident acc
        ),
        compiler_params=pltpu.CompilerParams(
            dimension_semantics=("arbitrary",),      # row axis is a reduction
            vmem_limit_bytes=32 * 1024 * 1024),
        cost_estimate=pl.CostEstimate(flops=flops,
                                      transcendentals=n * Jp,
                                      bytes_accessed=bytes_accessed),
    )(scale_arr, Xd, tT_scaled, t2_scaled)
    return gram, colsum


def hotelling_moments(X, Y, T, lengthscale, *, tile_rows_cap=1024,
                      mxu_dtype=jnp.float32):
    """Returns (cov_X, cov_Y, x_bar, y_bar).  No padded copy of X / Y is made."""
    nx, d = X.shape
    ny = Y.shape[0]
    J = T.shape[0]
    Jp = _round_up(J, 128)                       # lane-dense witness axis

    Xf = X.astype(jnp.float32)
    Yf = Y.astype(jnp.float32)
    Tf = T.astype(jnp.float32)

    # Lane-align the feature dim only when it is large AND misaligned: padding
    # costs an extra HBM copy of X/Y, which we deliberately avoid at small D.
    if d > 128 and d % 128 != 0:
        d_pad = _round_up(d, 128)
        Xf = jnp.pad(Xf, ((0, 0), (0, d_pad - d)))
        Yf = jnp.pad(Yf, ((0, 0), (0, d_pad - d)))
        Tf = jnp.pad(Tf, ((0, 0), (0, d_pad - d)))
        d = d_pad

    scale = 0.5 / (lengthscale ** 2)
    T_pad = jnp.zeros((Jp, d), jnp.float32).at[:J].set(Tf)
    tT_scaled = ((2.0 * scale) * T_pad.T).astype(mxu_dtype)           # (d, Jp)
    t2_scaled = (-scale) * jnp.sum(T_pad * T_pad, axis=1)[None, :]    # (1, Jp)

    gram_x, colsum_x = _hotelling_moments_one(
        Xf, tT_scaled, t2_scaled, scale,
        tile_rows_cap=tile_rows_cap, mxu_dtype=mxu_dtype)
    gram_y, colsum_y = _hotelling_moments_one(
        Yf, tT_scaled, t2_scaled, scale,
        tile_rows_cap=tile_rows_cap, mxu_dtype=mxu_dtype)

    x_bar = colsum_x[0, :J] / nx
    y_bar = colsum_y[0, :J] / ny
    # Analytic centering: (K - bar)^T (K - bar) = K^T K - n * bar bar^T.
    # (Algebraically exact; watch cancellation at very large n / lengthscale.)
    cov_X = gram_x[:J, :J] - nx * jnp.outer(x_bar, x_bar)
    cov_Y = gram_y[:J, :J] - ny * jnp.outer(y_bar, y_bar)
    return cov_X, cov_Y, x_bar, y_bar


# ------------------------------ module glue --------------------------------

def get_median_ls(T):
    """Median heuristic used in __init__ (Euclidean dist, sqrt of median).
    Eager-only (boolean-mask indexing), matching the torch.no_grad() init."""
    sq = jnp.sum((T[:, None, :] - T[None, :, :]) ** 2, axis=-1)
    dist = jnp.sqrt(jnp.maximum(sq, 0.0))
    pos = dist[dist > 0.0]
    return jnp.sqrt(jnp.median(pos))


def witness_forward(X, Y, T, raw_lengthscale, coeff=1e-5,
                    mxu_dtype=jnp.float32):
    nx, ny = X.shape[0], Y.shape[0]
    J = T.shape[0]
    # gpytorch RBFKernel applies a Positive (softplus) constraint to raw_lengthscale.
    lengthscale = jax.nn.softplus(raw_lengthscale)

    cov_X, cov_Y, x_bar, y_bar = hotelling_moments(
        X, Y, T, lengthscale, mxu_dtype=mxu_dtype)

    pooled = (cov_X + cov_Y) / (nx + ny - 2)
    diag = coeff * jnp.eye(J, dtype=jnp.float32)
    z = (x_bar - y_bar)[:, None]
    # torch.solve(z, A) solves A w = z ; (J, J) is tiny -> plain JAX solve.
    inv_z = jnp.linalg.solve(pooled + diag, z)
    return -nx * ny / (nx + ny) * jnp.sum(z * inv_z)


# ------------------------------ reference ----------------------------------

def _reference_forward(X, Y, T, raw_lengthscale, coeff=1e-5):
    l = jax.nn.softplus(raw_lengthscale)
    nx, ny = X.shape[0], Y.shape[0]

    def k_of(A):
        sq = (jnp.sum(A * A, 1, keepdims=True) + jnp.sum(T * T, 1)[None, :]
              - 2.0 * A @ T.T)
        return jnp.exp(-jnp.maximum(sq, 0.0) / (2.0 * l * l))

    def hot(A):
        kA = k_of(A)
        bar = kA.mean(0)
        kc = kA - bar
        return kc.T @ kc, bar

    cX, xb = hot(X)
    cY, yb = hot(Y)
    pooled = (cX + cY) / (nx + ny - 2)
    z = (xb - yb)[:, None]
    w = jnp.linalg.solve(pooled + coeff * jnp.eye(T.shape[0]), z)
    return -nx * ny / (nx + ny) * jnp.sum(z * w)


# --------------------------------- main -------------------------------------

if __name__ == "__main__":
    key = jax.random.PRNGKey(0)
    kx, ky, kt = jax.random.split(key, 3)

    hdim, n_witnesses, nx, ny = 32, 8, 64, 64
    X = jax.random.normal(kx, (nx, hdim), jnp.float32)
    Y = jax.random.normal(ky, (ny, hdim), jnp.float32) + 0.5
    # init_type='randn' : T ~ N(0, 1) with shape (n_witnesses, hdim)
    T = jax.random.normal(kt, (n_witnesses, hdim), jnp.float32)
    # TODO(synk): init_type='gaussian_fit' / 'median_noise' (numpy eig /
    # multivariate_normal) is host-side init code, not part of the forward
    # pass; not ported.

    raw_ls = get_median_ls(T)          # self.ls from get_median_ls

    stat = witness_forward(X, Y, T, raw_ls)
    stat = jax.block_until_ready(stat)

    ref = _reference_forward(X, Y, T, raw_ls)
    assert jnp.isfinite(stat), "non-finite test statistic"
    assert jnp.allclose(stat, ref, rtol=1e-4, atol=1e-3), (stat, ref)

    # Exercise the bf16-MXU fast path (f32 accumulation) with a loose check:
    # it is the production option on large shapes (perf review), but the
    # strict rtol=1e-4 validation above keeps f32 as the default.
    stat_bf16 = jax.block_until_ready(
        witness_forward(X, Y, T, raw_ls, mxu_dtype=jnp.bfloat16))
    assert jnp.isfinite(stat_bf16), "non-finite bf16 test statistic"
    assert jnp.allclose(stat_bf16, ref, rtol=0.15, atol=0.1), (stat_bf16, ref)

    print("KERNEL_OK")
</pallas_src>

<mosaic_0001>
module attributes {stable_mosaic.version = 11 : i64} {
  func.func @_hotelling_kernel(%arg0: i32, %arg1: memref<1x1xf32, #tpu.memory_space<smem>>, %arg2: memref<64x32xf32, #tpu.memory_space<vmem>>, %arg3: memref<32x128xf32, #tpu.memory_space<vmem>>, %arg4: memref<1x128xf32, #tpu.memory_space<vmem>>, %arg5: memref<128x128xf32, #tpu.memory_space<vmem>>, %arg6: memref<1x128xf32, #tpu.memory_space<vmem>>) attributes {dimension_semantics = [#tpu.dimension_semantics<arbitrary>], iteration_bounds = array<i64: 1>, scalar_prefetch = 0 : i64, scratch_operands = 0 : i64, tpu.core_type = #tpu.core_type<tc>, window_params = [{transform_indices = @transform_0, window_bounds = array<i64: 1, 1>}, {transform_indices = @transform_1, window_bounds = array<i64: 64, 32>}, {pipeline_mode = #tpu.pipeline_mode<synchronous>, transform_indices = @transform_2, window_bounds = array<i64: 32, 128>}, {pipeline_mode = #tpu.pipeline_mode<synchronous>, transform_indices = @transform_3, window_bounds = array<i64: 1, 128>}, {pipeline_mode = #tpu.pipeline_mode<synchronous>, transform_indices = @transform_4, window_bounds = array<i64: 128, 128>}, {pipeline_mode = #tpu.pipeline_mode<synchronous>, transform_indices = @transform_5, window_bounds = array<i64: 1, 128>}]} {
    %c0_i32 = arith.constant 0 : i32
    %0 = arith.cmpi eq, %arg0, %c0_i32 : i32
    %1 = arith.extui %0 : i1 to i32
    %c0_i32_0 = arith.constant 0 : i32
    %2 = arith.cmpi ne, %1, %c0_i32_0 : i32
    scf.if %2 {
      %cst_21 = arith.constant 0.000000e+00 : f32
      %29 = vector.broadcast %cst_21 : f32 to vector<128x128xf32>
      %c0_22 = arith.constant 0 : index
      %c0_23 = arith.constant 0 : index
      %30 = vector.load %arg5[%c0_22, %c0_23] : memref<128x128xf32, #tpu.memory_space<vmem>>, vector<128x128xf32>
      tpu.vector_store %arg5[%c0_22, %c0_23], %29 {strides = array<i32>} : memref<128x128xf32, #tpu.memory_space<vmem>>, vector<128x128xf32>,
      %cst_24 = arith.constant 0.000000e+00 : f32
      %31 = vector.broadcast %cst_24 : f32 to vector<1x128xf32>
      %c0_25 = arith.constant 0 : index
      %c0_26 = arith.constant 0 : index
      %32 = vector.load %arg6[%c0_25, %c0_26] : memref<1x128xf32, #tpu.memory_space<vmem>>, vector<1x128xf32>
      tpu.vector_store %arg6[%c0_25, %c0_26], %31 {strides = array<i32>} : memref<1x128xf32, #tpu.memory_space<vmem>>, vector<1x128xf32>,
    } else {
    }
    %c0 = arith.constant 0 : index
    %c0_1 = arith.constant 0 : index
    %3 = vector.load %arg2[%c0, %c0_1] : memref<64x32xf32, #tpu.memory_space<vmem>>, vector<64x32xf32>
    %c0_2 = arith.constant 0 : index
    %c0_3 = arith.constant 0 : index
    %4 = vector.load %arg3[%c0_2, %c0_3] : memref<32x128xf32, #tpu.memory_space<vmem>>, vector<32x128xf32>
    %cst = arith.constant dense<0.000000e+00> : vector<64x128xf32>
    %5 = tpu.matmul %3, %4, %cst {dimension_numbers = #tpu.dot_dimension_numbers<[1], [0], [0], [1], [0, 0, 1, 1], [], []>} : vector<64x32xf32>, vector<32x128xf32>, vector<64x128xf32> -> vector<64x128xf32>
    %6 = arith.mulf %3, %3 : vector<64x32xf32>
    %cst_4 = arith.constant dense<0.000000e+00> : vector<64xf32>
    %7 = vector.multi_reduction <add>, %6, %cst_4 [1] : vector<64x32xf32> to vector<64xf32>
    %8 = vector.shape_cast %7 : vector<64xf32> to vector<64x1xf32>
    %c0_5 = arith.constant 0 : index
    %c0_6 = arith.constant 0 : index
    %9 = vector.load %arg4[%c0_5, %c0_6] : memref<1x128xf32, #tpu.memory_space<vmem>>, vector<1x128xf32>
    %10 = vector.broadcast %9 : vector<1x128xf32> to vector<64x128xf32>
    %11 = arith.addf %5, %10 : vector<64x128xf32>
    %c0_7 = arith.constant 0 : index
    %c0_8 = arith.constant 0 : index
    %12 = memref.load %arg1[%c0_7, %c0_8] : memref<1x1xf32, #tpu.memory_space<smem>>
    %13 = vector.broadcast %12 : f32 to vector<64x1xf32>
    %14 = arith.mulf %8, %13 : vector<64x1xf32>
    %15 = vector.broadcast %14 : vector<64x1xf32> to vector<64x128xf32>
    %16 = arith.subf %11, %15 : vector<64x128xf32>
    %cst_9 = arith.constant 0.000000e+00 : f32
    %17 = vector.broadcast %cst_9 : f32 to vector<64x128xf32>
    %18 = arith.minimumf %16, %17 : vector<64x128xf32>
    %19 = math.exp %18 : vector<64x128xf32>
    %c0_10 = arith.constant 0 : index
    %c0_11 = arith.constant 0 : index
    %20 = vector.load %arg5[%c0_10, %c0_11] : memref<128x128xf32, #tpu.memory_space<vmem>>, vector<128x128xf32>
    %cst_12 = arith.constant dense<0.000000e+00> : vector<128x128xf32>
    %21 = tpu.matmul %19, %19, %cst_12 {dimension_numbers = #tpu.dot_dimension_numbers<[0], [0], [1], [1], [0, 1, 1, 1], [], []>} : vector<64x128xf32>, vector<64x128xf32>, vector<128x128xf32> -> vector<128x128xf32>
    %22 = arith.addf %20, %21 : vector<128x128xf32>
    %c0_13 = arith.constant 0 : index
    %c0_14 = arith.constant 0 : index
    %23 = vector.load %arg5[%c0_13, %c0_14] : memref<128x128xf32, #tpu.memory_space<vmem>>, vector<128x128xf32>
    tpu.vector_store %arg5[%c0_13, %c0_14], %22 {strides = array<i32>} : memref<128x128xf32, #tpu.memory_space<vmem>>, vector<128x128xf32>,
    %c0_15 = arith.constant 0 : index
    %c0_16 = arith.constant 0 : index
    %24 = vector.load %arg6[%c0_15, %c0_16] : memref<1x128xf32, #tpu.memory_space<vmem>>, vector<1x128xf32>
    %cst_17 = arith.constant 1.000000e+00 : f32
    %25 = vector.broadcast %cst_17 : f32 to vector<1x64xf32>
    %cst_18 = arith.constant dense<0.000000e+00> : vector<1x128xf32>
    %26 = tpu.matmul %25, %19, %cst_18 {dimension_numbers = #tpu.dot_dimension_numbers<[1], [0], [0], [1], [0, 0, 1, 1], [], []>} : vector<1x64xf32>, vector<64x128xf32>, vector<1x128xf32> -> vector<1x128xf32>
    %27 = arith.addf %24, %26 : vector<1x128xf32>
    %c0_19 = arith.constant 0 : index
    %c0_20 = arith.constant 0 : index
    %28 = vector.load %arg6[%c0_19, %c0_20] : memref<1x128xf32, #tpu.memory_space<vmem>>, vector<1x128xf32>
    tpu.vector_store %arg6[%c0_19, %c0_20], %27 {strides = array<i32>} : memref<1x128xf32, #tpu.memory_space<vmem>>, vector<1x128xf32>,
    return
  }
  func.func @transform_0(%arg0: i32) -> (i32, i32) {
    %c0_i32 = arith.constant 0 : i32
    %c0_i32_0 = arith.constant 0 : i32
    %c0_i32_1 = arith.constant 0 : i32
    return %c0_i32, %c0_i32_0 : i32, i32
  }
  func.func @transform_1(%arg0: i32) -> (i32, i32) {
    %c0_i32 = arith.constant 0 : i32
    %c0_i32_0 = arith.constant 0 : i32
    return %arg0, %c0_i32 : i32, i32
  }
  func.func @transform_2(%arg0: i32) -> (i32, i32) {
    %c0_i32 = arith.constant 0 : i32
    %c0_i32_0 = arith.constant 0 : i32
    %c0_i32_1 = arith.constant 0 : i32
    return %c0_i32, %c0_i32_0 : i32, i32
  }
  func.func @transform_3(%arg0: i32) -> (i32, i32) {
    %c0_i32 = arith.constant 0 : i32
    %c0_i32_0 = arith.constant 0 : i32
    %c0_i32_1 = arith.constant 0 : i32
    return %c0_i32, %c0_i32_0 : i32, i32
  }
  func.func @transform_4(%arg0: i32) -> (i32, i32) {
    %c0_i32 = arith.constant 0 : i32
    %c0_i32_0 = arith.constant 0 : i32
    %c0_i32_1 = arith.constant 0 : i32
    return %c0_i32, %c0_i32_0 : i32, i32
  }
  func.func @transform_5(%arg0: i32) -> (i32, i32) {
    %c0_i32 = arith.constant 0 : i32
    %c0_i32_0 = arith.constant 0 : i32
    %c0_i32_1 = arith.constant 0 : i32
    return %c0_i32, %c0_i32_0 : i32, i32
  }
}

</mosaic_0001>

<bundles_post_ra>
// kernel: tpu_custom_call.1
= control target key start
LH: loop header
LB: loop body
LE: loop exit
PB: predicated region body
PF: predicated region fallthrough
CT: control target
= control target key end

     0   :  { %12 = vsyncpa [#allocation4], 0  ;;  %vm63_vm0 = vcmask 261120   ;;  %s991_s0 = inlined_call_operand.<no memory space> [shape: f32[1,1], index: 0, kind: input, shape index: {}]   ;;  %s992_s1 = inlined_call_operand.vmem [shape: f32[64,32], index: 1, kind: input, shape index: {}]   ;;  %s993_s2 = inlined_call_operand.vmem [shape: f32[32,128], index: 2, kind: input, shape index: {}]   ;;  %s994_s3 = inlined_call_operand.vmem [shape: f32[1,128], index: 3, kind: input, shape index: {}]   ;;  %s995_s4 = inlined_call_operand.hbm [shape: f32[128,128], index: 4, kind: output, shape index: {0}]   ;;  %s996_s5 = inlined_call_operand.hbm [shape: f32[1,128], index: 5, kind: output, shape index: {1}]  }
   0x1   :  { %v54_v0 = vld [vmem:[%s993_s2 + $0x18] sm:$0xff]  ;;  %v53_v1 = vld [vmem:[%s993_s2 + $0x10] sm:$0xff]  ;;  %v43_v2 = vld [vmem:[%s992_s1] sm:$0xff] }
   0x2   :  { %717 = vmatprep.subr.mxu0 %v54_v0  ;;  %v44_v3 = vld [vmem:[%s992_s1 + $0x8] sm:$0xff]  ;;  %v55_v5 = vmul.f32 %v43_v2, %v43_v2  ;;  %725 = vmatprep.mubr.msk.f32.mxu0 %vm63_vm0, %v43_v2  ;;  %v45_v6 = vld [vmem:[%s992_s1 + $0x10] sm:$0xff]  ;;  %v46_v7 = vld [vmem:[%s992_s1 + $0x18] sm:$0xff] }
   0x3   :  { %718 = vmatpush3.msra.mxu0 %v54_v0  ;;  %v52_v4 = vld [vmem:[%s993_s2 + $0x8] sm:$0xff]  ;;  %v56_v8 = vmul.f32 %v44_v3, %v44_v3  ;;  %v57_v9 = vmul.f32 %v45_v6, %v45_v6  ;;  %v58_v10 = vmul.f32 %v46_v7, %v46_v7  ;;  %v51_v11 = vld [vmem:[%s993_s2] sm:$0xff] }
   0x4   :  { %719 = vmatprep.subr.mxu0 %v53_v1  ;;  %v64_v12 = vsel %vm63_vm0, %v55_v5, 0.0 }
   0x5   :  { %720 = vmatpush3.msra.mxu0 %v53_v1 }
   0x6   :  { %13 = vsyncpa [#allocation6], 0  ;;  %721 = vmatprep.subr.mxu0 %v52_v4  ;;  %v47_v13 = vld [vmem:[%s992_s1 + $0x20] sm:$0xff]  ;;  %65 = vadd.xlane.f32.xlu0 %v64_v12  ;;  %v70_v14 = vsel %vm63_vm0, %v57_v9, 0.0  ;;  %v48_v15 = vld [vmem:[%s992_s1 + $0x28] sm:$0xff]  ;;  %v67_v16 = vsel %vm63_vm0, %v56_v8, 0.0  ;;  %v225_v31 = vstv %s991_s0 }
   0x7   :  { %722 = vmatpush3.msra.mxu0 %v52_v4  ;;  %71 = vadd.xlane.f32.xlu1 %v70_v14  ;;  %v59_v17 = vmul.f32 %v47_v13, %v47_v13  ;;  %v73_v18 = vsel %vm63_vm0, %v58_v10, 0.0  ;;  %v60_v19 = vmul.f32 %v48_v15, %v48_v15  ;;  %v49_v20 = vld [vmem:[%s992_s1 + $0x30] sm:$0xff]  ;;  %v50_v21 = vld [vmem:[%s992_s1 + $0x38] sm:$0xff]  ;;  %v863_v28 = vmov 0.0   ;;  %v646_v34 = vld [vmem:[%s994_s3] ss:$0 sm:$0xff] }
   0x8   :  { %723 = vmatprep.subr.mxu0 %v51_v11  ;;  %v61_v23 = vmul.f32 %v49_v20, %v49_v20  ;;  %v62_v25 = vmul.f32 %v50_v21, %v50_v21  ;;  %42 = vst [vmem:[#allocation5] sm:$0x1] %v863_v28  ;;  %vm314_vm1 = vcmask 523264   ;;  %vm864_vm2 = vmmov 0   ;;  %s866_s0 = smov [#allocation5]  }
   0x9   :  { %724 = vmatpush3.msra.mxu0 %v51_v11  ;;  %v76_v22 = vsel %vm63_vm0, %v59_v17, 0.0  ;;  %v79_v24 = vsel %vm63_vm0, %v60_v19, 0.0  ;;  %s634_s3 = sshll.u32 %s866_s0, 4  ;;  %s635_s3 = int_to_ptr.vmem [resolvable:$true] %s634_s3 }
   0xa   :  { %726 = vmatmul.mubr.msk.f32.vlgmr.msra.gmra.mxu0 %vm63_vm0, %v44_v3  ;;  %68 = vadd.xlane.f32.xlu0 %v67_v16  ;;  %v82_v26 = vsel %vm63_vm0, %v61_v23, 0.0  ;;  %v85_v27 = vsel %vm63_vm0, %v62_v25, 0.0  ;;  %s819_s19 = scalar_lea.vmem %s635_s3, 16  ;;  %s823_s20 = scalar_lea.vmem %s635_s3, 32 }
   0xb   :  { %728 = vmatprep.mubr.msk.f32.mxu0 %vm63_vm0, %v45_v6  ;;  %74 = vadd.xlane.f32.xlu1 %v73_v18  ;;  %p820_p0 = scmp.ne.s32.totalorder %s635_s3, %s819_s19  ;;  %p824_p1 = scmp.lt.s32.totalorder %s635_s3, %s635_s3 }
   0xc   :  { %777 = vmatprep.subr.mxu0 %v863_v28  ;;  %p825_p2 = scmp.lt.s32.totalorder %s823_s20, %s819_s19 }
   0xe   :  { %729 = vmatmul.mubr.msk.f32.gmra.mxu0 %vm63_vm0, %v46_v7  ;;  %77 = vadd.xlane.f32.xlu0 %v76_v22  ;;  %p826_p3 = por %p825_p2, %p824_p1 }
   0xf   :  { %731 = vmatprep.mubr.msk.f32.mxu0 %vm63_vm0, %v47_v13  ;;  %80 = vadd.xlane.f32.xlu1 %v79_v24 }
  0x10   :  { %p827_p4 = pnand %p826_p3, %p820_p0 }
  0x12   :  { %732 = vmatmul.mubr.msk.f32.gmra.mxu0 %vm63_vm0, %v48_v15  ;;  %83 = vadd.xlane.f32.xlu0 %v82_v26 }
  0x13   :  { %734 = vmatprep.mubr.msk.f32.mxu0 %vm63_vm0, %v49_v20  ;;  %86 = vadd.xlane.f32.xlu1 %v85_v27 }
  0x16   :  { %735 = vmatmul.mubr.msk.f32.gmra.mxu0 %vm63_vm0, %v50_v21 }
  0x17   :  { %793 = vmatprep.mubr.msk.f32.mxu0 %vm864_vm2, %v863_v28 }
  0x8f   :  { %v66_v29 = vpop.xlane.xlu0 %65 }
  0x90   :  { %v72_v30 = vpop.xlane.xlu1 %71  ;;  %v226_v37 = vmul.f32 %v225_v31, %v66_v29 }
  0x91   :  { %v228_v46 = vmul.f32 %v225_v31, %v72_v30 }
  0x93   :  { %v69_v32 = vpop.xlane.xlu0 %68 }
  0x94   :  { %v75_v33 = vpop.xlane.xlu1 %74  ;;  %v227_v35 = vmul.f32 %v225_v31, %v69_v32  ;;  %v865_v32 = vmov 1.0  }
  0x95   :  { %v229_v43 = vmul.f32 %v225_v31, %v75_v33 }
  0x97   :  { %v78_v45 = vpop.xlane.xlu0 %77 }
  0x98   :  { %v81_v40 = vpop.xlane.xlu1 %80  ;;  %v230_v62 = vmul.f32 %v225_v31, %v78_v45 }
  0x99   :  { %v231_v54 = vmul.f32 %v225_v31, %v81_v40 }
  0x9b   :  { %v84_v63 = vpop.xlane.xlu0 %83 }
  0x9c   :  { %v87_v56 = vpop.xlane.xlu1 %86  ;;  %v232_v7 = vmul.f32 %v225_v31, %v84_v63 }
  0x9d   :  { %v233_v2 = vmul.f32 %v225_v31, %v87_v56 }
  0xca   :  { %v727_v36 = vpop.f32.mrf.mxu0 }
  0xcb   :  { %v191_v38 = vadd.f32 %v727_v36, %v646_v34 }
  0xcc   :  { %v185_v39 = vpop.f32.mrf.mxu0 }
  0xcd   :  { %v235_v41 = vsub.f32 %v191_v38, %v227_v35  ;;  %v186_v42 = vadd.f32 %v646_v34, %v185_v39 }
  0xce   :  { %v730_v44 = vpop.f32.mrf.mxu0 }
  0xcf   :  { %v234_v47 = vsub.f32 %v186_v42, %v226_v37  ;;  %v201_v48 = vadd.f32 %v730_v44, %v646_v34  ;;  %v243_v49 = vmin.f32 %v235_v41, 0.0 }
  0xd0   :  { %v195_v50 = vpop.f32.mrf.mxu0 }
  0xd1   :  { %v242_v51 = vmin.f32 %v234_v47, 0.0  ;;  %v196_v52 = vadd.f32 %v646_v34, %v195_v50  ;;  %v237_v53 = vsub.f32 %v201_v48, %v229_v43  ;;  %v252_v59 = vmul.f32 1.442695, %v243_v49  ;;  %v540_v49 = vld [vmem:[#allocation5] sm:$0x1] }
  0xd2   :  { %v733_v55 = vpop.f32.mrf.mxu0 }
  0xd3   :  { %v250_v57 = vmul.f32 1.442695, %v242_v51  ;;  %v236_v58 = vsub.f32 %v196_v52, %v228_v46  ;;  %v211_v60 = vadd.f32 %v733_v55, %v646_v34  ;;  %v245_v3 = vmin.f32 %v237_v53, 0.0 }
  0xd4   :  { %v205_v61 = vpop.f32.mrf.mxu0 }
  0xd5   :  { %803 = vpow2.f32 %v250_v57  ;;  %v244_v0 = vmin.f32 %v236_v58, 0.0  ;;  %v206_v1 = vadd.f32 %v646_v34, %v205_v61  ;;  %v239_v4 = vsub.f32 %v211_v60, %v231_v54 }
  0xd6   :  { %v736_v5 = vpop.f32.mrf.mxu0  ;;  %805 = vpow2.f32 %v252_v59  ;;  %v256_v14 = vmul.f32 1.442695, %v245_v3 }
  0xd7   :  { %v221_v6 = vadd.f32 %v736_v5, %v646_v34  ;;  %v247_v8 = vmin.f32 %v239_v4, 0.0  ;;  %v254_v10 = vmul.f32 1.442695, %v244_v0  ;;  %v238_v11 = vsub.f32 %v206_v1, %v230_v62 }
  0xd8   :  { %v215_v9 = vpop.f32.mrf.mxu0 }
  0xd9   :  { %v241_v12 = vsub.f32 %v221_v6, %v233_v2  ;;  %v216_v13 = vadd.f32 %v646_v34, %v215_v9  ;;  %v260_v17 = vmul.f32 1.442695, %v247_v8  ;;  %807 = vpow2.f32 %v254_v10 }
  0xda   :  { %v246_v18 = vmin.f32 %v238_v11, 0.0  ;;  %809 = vpow2.f32 %v256_v14 }
  0xdb   :  { %v249_v15 = vmin.f32 %v241_v12, 0.0  ;;  %v240_v16 = vsub.f32 %v216_v13, %v232_v7 }
  0xdc   :  { %v258_v22 = vmul.f32 1.442695, %v246_v18 }
  0xdd   :  { %v264_v19 = vmul.f32 1.442695, %v249_v15  ;;  %v248_v20 = vmin.f32 %v240_v16, 0.0 }
  0xdf   :  { %811 = vpow2.f32 %v264_v19  ;;  %v262_v21 = vmul.f32 1.442695, %v248_v20 }
  0xe0   :  { %813 = vpow2.f32 %v260_v17 }
  0xe1   :  { %815 = vpow2.f32 %v262_v21 }
  0xe2   :  { %v804_v23 = vpop.eup %803  ;;  %817 = vpow2.f32 %v258_v22 }
  0xe3   :  { %282 = vxpose.xlu0.b32.start [1/8] (short) %v804_v23, 128  ;;  %v806_v24 = vpop.eup %805 }
  0xe6   :  { %v808_v25 = vpop.eup %807 }
  0xe7   :  { %283 = vxpose.xlu0.b32.cont [2/8] (short) %v806_v24, 128  ;;  %v810_v26 = vpop.eup %809 }
  0xeb   :  { %284 = vxpose.xlu0.b32.cont [3/8] (short) %v808_v25, 128 }
  0xec   :  { %v812_v27 = vpop.eup %811 }
  0xed   :  { %v814_v29 = vpop.eup %813  ;;  %737 = vmatprep.subr.mxu1 %v812_v27  ;;  %778 = vmatpush3.msra.mxu0 %v812_v27 }
  0xee   :  { %v816_v30 = vpop.eup %815  ;;  %738 = vmatpush3.msra.mxu1 %v812_v27  ;;  %779 = vmatprep.subr.mxu0 %v863_v28 }
  0xef   :  { %285 = vxpose.xlu0.b32.cont [4/8] (short) %v810_v26, 128  ;;  %739 = vmatprep.subr.mxu1 %v816_v30  ;;  %v818_v31 = vpop.eup %817 }
  0xf0   :  { %780 = vmatpush3.msra.mxu0 %v816_v30  ;;  %740 = vmatpush3.msra.mxu1 %v816_v30 }
  0xf1   :  { %781 = vmatprep.subr.mxu0 %v863_v28  ;;  %741 = vmatprep.subr.mxu1 %v814_v29 }
  0xf2   :  { %782 = vmatpush3.msra.mxu0 %v814_v29  ;;  %742 = vmatpush3.msra.mxu1 %v814_v29 }
  0xf3   :  { %783 = vmatprep.subr.mxu0 %v863_v28  ;;  %286 = vxpose.xlu0.b32.cont [5/8] (short) %v818_v31, 128 }
  0xf4   :  { %743 = vmatprep.subr.mxu1 %v818_v31  ;;  %784 = vmatpush3.msra.mxu0 %v818_v31 }
  0xf5   :  { %744 = vmatpush3.msra.mxu1 %v818_v31  ;;  %785 = vmatprep.subr.mxu0 %v863_v28 }
  0xf6   :  { %745 = vmatprep.subr.mxu1 %v810_v26  ;;  %786 = vmatpush3.msra.mxu0 %v810_v26 }
  0xf7   :  { %746 = vmatpush3.msra.mxu1 %v810_v26  ;;  %787 = vmatprep.subr.mxu0 %v863_v28 }
  0xf8   :  { %287 = vxpose.xlu0.b32.cont [6/8] (short) %v814_v29, 128  ;;  %747 = vmatprep.subr.mxu1 %v808_v25 }
  0xf9   :  { %788 = vmatpush3.msra.mxu0 %v808_v25  ;;  %748 = vmatpush3.msra.mxu1 %v808_v25 }
  0xfa   :  { %789 = vmatprep.subr.mxu0 %v863_v28  ;;  %749 = vmatprep.subr.mxu1 %v806_v24 }
  0xfb   :  { %790 = vmatpush3.msra.mxu0 %v806_v24  ;;  %750 = vmatpush3.msra.mxu1 %v806_v24 }
  0xfc   :  { %791 = vmatprep.subr.mxu0 %v863_v28  ;;  %288 = vxpose.xlu0.b32.cont [7/8] (short) %v816_v30, 128 }
  0xfd   :  { %751 = vmatprep.subr.mxu1 %v804_v23  ;;  %792 = vmatpush3.msra.mxu0 %v804_v23 }
  0xfe   :  { %752 = vmatpush3.msra.mxu1 %v804_v23  ;;  %794 = vmatmul.mubr.msk.f32.vlgmr.msra.gmra.mxu0 %vm314_vm1, %v865_v32 }
 0x100   :  { %289 = vxpose.xlu0.b32.end [8/8] (short) %v812_v27, 128 }
 0x160   :  { %v298_v33 = vpop.trf.xlu0 }
 0x161   :  { %753 = vmatprep.mubr.msk.f32.mxu1 %vm314_vm1, %v298_v33 }
 0x164   :  { %v299_v34 = vpop.trf.xlu0 }
 0x165   :  { %754 = vmatmul.mubr.msk.f32.vlgmr.msra.gmra.mxu1 %vm314_vm1, %v299_v34 }
 0x168   :  { %v300_v35 = vpop.trf.xlu0 }
 0x169   :  { %756 = vmatprep.mubr.msk.f32.mxu1 %vm314_vm1, %v300_v35 }
 0x16c   :  { %v301_v36 = vpop.trf.xlu0 }
 0x16d   :  { %757 = vmatmul.mubr.msk.f32.gmra.mxu1 %vm314_vm1, %v301_v36 }
 0x170   :  { %v302_v37 = vpop.trf.xlu0 }
 0x171   :  { %759 = vmatprep.mubr.msk.f32.mxu1 %vm314_vm1, %v302_v37 }
 0x174   :  { %v303_v38 = vpop.trf.xlu0 }
 0x175   :  { %760 = vmatmul.mubr.msk.f32.gmra.mxu1 %vm314_vm1, %v303_v38 }
 0x178   :  { %v304_v28 = vpop.trf.xlu0 }
 0x179   :  { %762 = vmatprep.mubr.msk.f32.mxu1 %vm314_vm1, %v304_v28 }
 0x17c   :  { %v305_v39 = vpop.trf.xlu0 }
 0x17d   :  { %763 = vmatmul.mubr.msk.f32.gmra.mxu1 %vm314_vm1, %v305_v39 }
 0x180   :  { %v306_v40 = vpop.trf.xlu0 }
 0x181   :  { %765 = vmatprep.mubr.msk.f32.mxu1 %vm314_vm1, %v306_v40 }
 0x184   :  { %v307_v41 = vpop.trf.xlu0 }
 0x185   :  { %766 = vmatmul.mubr.msk.f32.gmra.mxu1 %vm314_vm1, %v307_v41 }
 0x188   :  { %v308_v42 = vpop.trf.xlu0 }
 0x189   :  { %768 = vmatprep.mubr.msk.f32.mxu1 %vm314_vm1, %v308_v42 }
 0x18c   :  { %v309_v43 = vpop.trf.xlu0 }
 0x18d   :  { %769 = vmatmul.mubr.msk.f32.gmra.mxu1 %vm314_vm1, %v309_v43 }
 0x190   :  { %v310_v44 = vpop.trf.xlu0 }
 0x191   :  { %771 = vmatprep.mubr.msk.f32.mxu1 %vm314_vm1, %v310_v44 }
 0x194   :  { %v311_v45 = vpop.trf.xlu0 }
 0x195   :  { %772 = vmatmul.mubr.msk.f32.gmra.mxu1 %vm314_vm1, %v311_v45 }
 0x198   :  { %v312_v46 = vpop.trf.xlu0 }
 0x199   :  { %774 = vmatprep.mubr.msk.f32.mxu1 %vm314_vm1, %v312_v46 }
 0x19c   :  { %v313_v47 = vpop.trf.xlu0 }
 0x19d   :  { %775 = vmatmul.mubr.msk.f32.gmra.mxu1 %vm314_vm1, %v313_v47 }
 0x1be   :  { %v610_v48 = vpop.f32.mrf.mxu0 }
 0x1bf   :  { %v614_v51 = vadd.f32 %v610_v48, %v540_v49 }
 0x1c0   :  { %v795_v50 = vpop.f32.mrf.mxu0 }
 0x1c1   :  { %615 = vst [vmem:[#allocation5] sm:$0x1] %v614_v51 }
 0x1c2   :  { %830 = shalt.err (!%p827_p4)
}
 0x1c3   :  { %637 = dma.vmem_to_hbm [thread:$0]  %s635_s3, 16, %s996_s5, [#allocation6]  }
 0x1c4   :  { %s867_s5 = smov [#allocation3]  }
 0x1c5   :  { %s621_s23 = sshll.u32 %s867_s5, 4  ;;  %s622_s23 = int_to_ptr.vmem [resolvable:$true] %s621_s23 }
 0x1c6   :  { %s839_s24 = scalar_lea.vmem %s622_s23, 2048  ;;  %p844_p6 = scmp.lt.s32.totalorder %s622_s23, %s622_s23 }
 0x1c7   :  { %p840_p5 = scmp.ne.s32.totalorder %s622_s23, %s839_s24  ;;  %p845_p7 = scmp.lt.s32.totalorder %s839_s24, %s839_s24 }
 0x1c9   :  { %p846_p8 = por %p845_p7, %p844_p6 }
 0x1cb   :  { %p847_p9 = pnand %p846_p8, %p840_p5 }
 0x225   :  { %v755_v52 = vpop.f32.mrf.mxu1 }
 0x226   :  { %525 = vst [vmem:[#allocation3 + $0x8] sm:$0xff] %v755_v52 }
 0x227   :  { %v429_v53 = vpop.f32.mrf.mxu1 }
 0x228   :  { %524 = vst [vmem:[#allocation3] sm:$0xff] %v429_v53 }
 0x22d   :  { %v758_v54 = vpop.f32.mrf.mxu1 }
 0x22e   :  { %527 = vst [vmem:[#allocation3 + $0x18] sm:$0xff] %v758_v54 }
 0x22f   :  { %v439_v55 = vpop.f32.mrf.mxu1 }
 0x230   :  { %526 = vst [vmem:[#allocation3 + $0x10] sm:$0xff] %v439_v55 }
 0x235   :  { %v761_v56 = vpop.f32.mrf.mxu1 }
 0x236   :  { %529 = vst [vmem:[#allocation3 + $0x28] sm:$0xff] %v761_v56 }
 0x237   :  { %v449_v57 = vpop.f32.mrf.mxu1 }
 0x238   :  { %528 = vst [vmem:[#allocation3 + $0x20] sm:$0xff] %v449_v57 }
 0x23d   :  { %v764_v58 = vpop.f32.mrf.mxu1 }
 0x23e   :  { %531 = vst [vmem:[#allocation3 + $0x38] sm:$0xff] %v764_v58 }
 0x23f   :  { %v459_v59 = vpop.f32.mrf.mxu1 }
 0x240   :  { %530 = vst [vmem:[#allocation3 + $0x30] sm:$0xff] %v459_v59 }
 0x245   :  { %v767_v60 = vpop.f32.mrf.mxu1 }
 0x246   :  { %533 = vst [vmem:[#allocation3 + $0x48] sm:$0xff] %v767_v60 }
 0x247   :  { %v469_v61 = vpop.f32.mrf.mxu1 }
 0x248   :  { %532 = vst [vmem:[#allocation3 + $0x40] sm:$0xff] %v469_v61 }
 0x24d   :  { %v770_v62 = vpop.f32.mrf.mxu1 }
 0x24e   :  { %535 = vst [vmem:[#allocation3 + $0x58] sm:$0xff] %v770_v62 }
 0x24f   :  { %v479_v63 = vpop.f32.mrf.mxu1 }
 0x250   :  { %534 = vst [vmem:[#allocation3 + $0x50] sm:$0xff] %v479_v63 }
 0x255   :  { %v773_v0 = vpop.f32.mrf.mxu1 }
 0x256   :  { %537 = vst [vmem:[#allocation3 + $0x68] sm:$0xff] %v773_v0 }
 0x257   :  { %v489_v1 = vpop.f32.mrf.mxu1 }
 0x258   :  { %536 = vst [vmem:[#allocation3 + $0x60] sm:$0xff] %v489_v1 }
 0x25d   :  { %v776_v2 = vpop.f32.mrf.mxu1 }
 0x25e   :  { %539 = vst [vmem:[#allocation3 + $0x78] sm:$0xff] %v776_v2 }
 0x25f   :  { %v499_v3 = vpop.f32.mrf.mxu1 }
 0x260   :  { %538 = vst [vmem:[#allocation3 + $0x70] sm:$0xff] %v499_v3 }
 0x261   :  { %850 = shalt.err (!%p847_p9)
}
 0x262   :  { %s868_s25 = smov 128   ;;  %s869_s26 = smov 8  }
 0x263   :  { %627 = dma.vmem_to_hbm [thread:$0]  %s622_s23, 2048, %s995_s4, [#allocation4], %s868_s25, %s868_s25, %s869_s26  }
 0x264   :  { %859 = dma.done.wait [#allocation4], 2048  }
 0x265   :  { %860 = vsyncadd [#allocation4], 4294965248 }
 0x266   :  { %861 = dma.done.wait [#allocation6], 16  }
 0x267   :  { %862 = vsyncadd [#allocation6], 4294967280 }
 0x268   :  { %644 = vsyncpa [#allocation4], 1 }
 0x269   :  { %645 = vsyncpa [#allocation6], 1 }

</bundles_post_ra>
